<compile_context>
chip_gen: v7x
topology: tpu7x:2x2x1
jax: 0.10.0
libtpu: 0.0.40
codegen_flags: <defaults>
</compile_context>

<pallas_src>
import jax
import jax.numpy as jnp
from jax.experimental import pallas as pl
from jax.experimental.pallas import tpu as pltpu

_LANES = 128


def _quant_kernel(scale_ref, x_ref, o_ref):
    # scale_ref: (1, 1) f32 in SMEM; x_ref/o_ref: (block_rows, 128) in VMEM (native dtype).
    s = scale_ref[0, 0]
    inv = 1.0 / s                          # scalar reciprocal, hoisted off the vector path
    x = x_ref[...].astype(jnp.float32)     # in-register upcast only
    y = jnp.round(x * s) * inv             # round-half-to-even == torch.round
    o_ref[...] = y.astype(o_ref.dtype)


def _pick_block_rows(rows: int, itemsize: int) -> int:
    """~2 MiB tiles, row count a multiple of 8, and >=2 grid steps when possible."""
    if rows <= 8:
        return rows  # full-extent block (allowed by the (8,128) rule)
    target = max(8, (((2 * 1024 * 1024) // (_LANES * itemsize)) // 8) * 8)
    # cap so the single "parallel" grid axis has at least 2 steps (v7x has 2 TensorCores)
    cap = max(8, ((rows // 2 + 7) // 8) * 8)
    return min(target, cap)


def learnable_quantizer(x, scale, *, block_rows=None, min_pallas_elems=16384):
    """y = round(x * scale) / scale, elementwise; matches LearnableScaledRoundSTE.forward."""
    n = x.size
    if n == 0:
        return x
    if n < min_pallas_elems:
        # Kernel launch + pipeline prologue dominates sub-microsecond work.
        s = jnp.asarray(scale, dtype=jnp.float32)
        return (jnp.round(x.astype(jnp.float32) * s) / s).astype(x.dtype)

    orig_shape = x.shape
    orig_dtype = x.dtype
    itemsize = jnp.dtype(orig_dtype).itemsize

    # Flatten to a lane-dense (rows, 128) slab in the NATIVE dtype.
    rem = n % _LANES
    if rem == 0:
        x2d = x.reshape(n // _LANES, _LANES)          # pure metadata reshape, no HBM pass
    else:
        pad = _LANES - rem                            # only the tiny tail gets padded
        x2d = jnp.pad(x.reshape(-1), (0, pad)).reshape((n + pad) // _LANES, _LANES)
    rows = x2d.shape[0]

    if block_rows is None:
        block_rows = _pick_block_rows(rows, itemsize)
    block_rows = min(block_rows, rows)
    if block_rows < rows and block_rows % 8 != 0:
        block_rows = max(8, (block_rows // 8) * 8)

    grid = (pl.cdiv(rows, block_rows),)               # ragged last block is write-masked
    scale_arr = jnp.asarray(scale, dtype=jnp.float32).reshape(1, 1)

    out2d = pl.pallas_call(
        _quant_kernel,
        out_shape=jax.ShapeDtypeStruct((rows, _LANES), orig_dtype),
        grid_spec=pltpu.PrefetchScalarGridSpec(
            num_scalar_prefetch=0,
            grid=grid,
            in_specs=[
                pl.BlockSpec(memory_space=pltpu.SMEM),                  # scalar scale
                pl.BlockSpec((block_rows, _LANES), lambda i: (i, 0)),   # x tile
            ],
            out_specs=pl.BlockSpec((block_rows, _LANES), lambda i: (i, 0)),
        ),
        compiler_params=pltpu.CompilerParams(
            dimension_semantics=("parallel",),
        ),
    )(scale_arr, x2d)

    if rem == 0:
        return out2d.reshape(orig_shape)
    return out2d.reshape(-1)[:n].reshape(orig_shape)


if __name__ == "__main__":
    key = jax.random.PRNGKey(0)
    k1, k2, k3 = jax.random.split(key, 3)

    # deterministic parameter init matching the module (init_scale = 2**12, power of two)
    scale = jnp.float32(2 ** 12)

    # 1) small f32 NCHW activation (typical conv input); force the Pallas path
    x1 = jax.random.normal(k1, (2, 4, 16, 16), dtype=jnp.float32)
    y1 = jax.block_until_ready(learnable_quantizer(x1, scale, min_pallas_elems=0))
    ref1 = jnp.round(x1 * scale) / scale
    assert y1.shape == x1.shape and y1.dtype == x1.dtype
    assert jnp.max(jnp.abs(y1 - ref1)) == 0.0

    # 2) bf16 activation: native-dtype HBM I/O through the kernel
    x2 = jax.random.normal(k2, (2, 8, 32, 32), dtype=jnp.bfloat16)
    y2 = jax.block_until_ready(learnable_quantizer(x2, scale, min_pallas_elems=0))
    ref2 = (jnp.round(x2.astype(jnp.float32) * scale) / scale).astype(jnp.bfloat16)
    assert y2.shape == x2.shape and y2.dtype == x2.dtype
    assert jnp.max(jnp.abs(y2.astype(jnp.float32) - ref2.astype(jnp.float32))) == 0.0

    # 3) ragged total size (not a multiple of 128): tail pad + partial last block
    x3 = jax.random.normal(k3, (3, 5, 7, 11), dtype=jnp.float32)
    y3 = jax.block_until_ready(learnable_quantizer(x3, scale, min_pallas_elems=0))
    ref3 = jnp.round(x3 * scale) / scale
    assert y3.shape == x3.shape and y3.dtype == x3.dtype
    assert jnp.max(jnp.abs(y3 - ref3)) == 0.0

    # TODO(synk): STE backward (grad_x = g*scale, grad_scale = sum(g*x)) is not implemented;
    # it would need a jax.custom_vjp wrapper (and a reduction kernel) around this forward.
    print("KERNEL_OK")
</pallas_src>

<mosaic_0001>
module attributes {stable_mosaic.version = 11 : i64} {
  func.func @_quant_kernel(%arg0: i32, %arg1: memref<1x1xf32, #tpu.memory_space<smem>>, %arg2: memref<8x128xf32, #tpu.memory_space<vmem>>, %arg3: memref<8x128xf32, #tpu.memory_space<vmem>>) attributes {dimension_semantics = [#tpu.dimension_semantics<parallel>], iteration_bounds = array<i64: 2>, scalar_prefetch = 0 : i64, scratch_operands = 0 : i64, tpu.core_type = #tpu.core_type<tc>, window_params = [{transform_indices = @transform_0, window_bounds = array<i64: 1, 1>}, {transform_indices = @transform_1, window_bounds = array<i64: 8, 128>}, {transform_indices = @transform_2, window_bounds = array<i64: 8, 128>}]} {
    %c0 = arith.constant 0 : index
    %c0_0 = arith.constant 0 : index
    %0 = memref.load %arg1[%c0, %c0_0] : memref<1x1xf32, #tpu.memory_space<smem>>
    %cst = arith.constant 1.000000e+00 : f32
    %1 = arith.divf %cst, %0 : f32
    %c0_1 = arith.constant 0 : index
    %c0_2 = arith.constant 0 : index
    %2 = vector.load %arg2[%c0_1, %c0_2] : memref<8x128xf32, #tpu.memory_space<vmem>>, vector<8x128xf32>
    %3 = vector.broadcast %0 : f32 to vector<8x128xf32>
    %4 = arith.mulf %2, %3 : vector<8x128xf32>
    %5 = math.roundeven %4 : vector<8x128xf32>
    %6 = vector.broadcast %1 : f32 to vector<8x128xf32>
    %7 = arith.mulf %5, %6 : vector<8x128xf32>
    %c0_3 = arith.constant 0 : index
    %c0_4 = arith.constant 0 : index
    %8 = vector.load %arg3[%c0_3, %c0_4] : memref<8x128xf32, #tpu.memory_space<vmem>>, vector<8x128xf32>
    tpu.vector_store %arg3[%c0_3, %c0_4], %7 {strides = array<i32>} : memref<8x128xf32, #tpu.memory_space<vmem>>, vector<8x128xf32>,
    return
  }
  func.func @transform_0(%arg0: i32) -> (i32, i32) {
    %c0_i32 = arith.constant 0 : i32
    %c0_i32_0 = arith.constant 0 : i32
    %c0_i32_1 = arith.constant 0 : i32
    return %c0_i32, %c0_i32_0 : i32, i32
  }
  func.func @transform_1(%arg0: i32) -> (i32, i32) {
    %c0_i32 = arith.constant 0 : i32
    %c0_i32_0 = arith.constant 0 : i32
    return %arg0, %c0_i32 : i32, i32
  }
  func.func @transform_2(%arg0: i32) -> (i32, i32) {
    %c0_i32 = arith.constant 0 : i32
    %c0_i32_0 = arith.constant 0 : i32
    return %arg0, %c0_i32 : i32, i32
  }
}

</mosaic_0001>

<bundles_post_ra>
// kernel: tpu_custom_call.1
= control target key start
LH: loop header
LB: loop body
LE: loop exit
PB: predicated region body
PF: predicated region fallthrough
CT: control target
= control target key end

     0   :  { %s597_s0 = inlined_call_operand.<no memory space> [shape: f32[1,1], index: 0, kind: input, shape index: {}]   ;;  %s598_s1 = inlined_call_operand.hbm [shape: f32[16,128], index: 1, kind: input, shape index: {}]   ;;  %s599_s2 = inlined_call_operand.hbm [shape: f32[16,128], index: 2, kind: output, shape index: {}]  }
   0x1   :  { %7 = sst [smem:[#allocation2]] %s597_s0 }
   0x2   :  { %8 = vsyncpa [#allocation4], 0 }
   0x3   :  { %10 = vsyncpa [#allocation4 + $0x1], 0 }
   0x4   :  { %11 = vsyncpa [#allocation5], 0 }
   0x5   :  { %13 = vsyncpa [#allocation5 + $0x1], 0  ;;  %s436_s11 = smov 0   ;;  %s438_s12 = smov 0  }
   0x6   :  { %s440_s13 = smov 0   ;;  %s442_s14 = smov 0  }
   0x7 LB: > { %s457_s0 = sadd.s32 4294967295, %s414_s14   ;;  %s255_s15 = sadd.s32 4294967294, %s414_s14   ;;  %s414_s14 = sphi %s442_s14, %s614_s14   ;;  %s410_s13 = sphi %s440_s13, %s613_s13   ;;  %s406_s12 = sphi %s438_s12, %s612_s12   ;;  %s402_s11 = sphi %s436_s11, %s611_s11  }
   0x8   : > { %s461_s16 = sadd.s32 1, %s414_s14   ;;  %s47_s17 = sadd.s32 1, %s410_s13 }
   0x9   : > { %s44_s18 = ssub.s32 %s414_s14, %s461_s16  ;;  %p54_p0 = scmp.ne.s32.totalorder %s410_s13, %s406_s12 }
   0xa   : > { %p45_p1 = scmp.eq.s32.totalorder %s44_s18, 0  ;;  %p55_p2 = scmp.eq.s32.totalorder %s414_s14, 0 }
   0xb   : > { %p60_p3 = scmp.ne.s32.totalorder %s406_s12, %s402_s11  ;;  %p61_p4 = scmp.eq.s32.totalorder %s457_s0, 0 }
   0xc   : > { %s473_s19 = scalar_select %p45_p1, %s410_s13, %s47_s17  }
   0xd   : > { %p475_p5 = por %p55_p2, %p54_p0  ;;  %p479_p6 = por %p61_p4, %p60_p3 }
   0xe   : > { %p84_p7 = scmp.eq.s32.totalorder %s457_s0, 1  ;;  %p90_p8 = scmp.eq.s32.totalorder %s255_s15, 1 }
   0xf   : > { %p282_p10 = scmp.lt.s32.totalorder %s414_s14, 2  ;;  %s113_s24 = sand.u32 1, %s410_s13  }
  0x10   : > { %p486_p11 = por %p84_p7, %p54_p0  ;;  %p490_p12 = por %p90_p8, %p60_p3 }
  0x11   : > { %s259_s25 = sshll.u32 %s414_s14, 7  ;;  %s258_s26 = sshll.u32 %s113_s24, 3 }
  0x12   : > { %s603_s22 = scalar_select %p486_p11, 1, 0 }
  0x13   : > { %s604_s23 = scalar_select %p490_p12, 1, 0 }
  0x14   : > { %s499_s29 = scalar_lea.hbm %s598_s1, %s259_s25  ;;  %s117_s30 = scalar_lea.vmem [#allocation3], %s258_s26 }
  0x15   : > { %s124_s3 = sshll.u32 %s117_s30, 4  ;;  %p503_p13 = pnand %p282_p10, %p475_p5  ;;  %s507_s3 = int_to_ptr.vmem [resolvable:$true] %s124_s3 }
  0x16   : > { %s114_s5 = scalar_lea.sflag [#allocation4], %s113_s24  ;;  %s318_s6 = scalar_lea.hbm %s499_s29, 128 }
  0x17   : > { %p319_p2 = scmp.ne.s32.totalorder %s499_s29, %s318_s6  ;;  %p320_p3 = pneg %p503_p13 }
  0x18   : > { %s323_s9 = scalar_lea.hbm %s598_s1, 256  ;;  %p324_p5 = scmp.lt.u32.totalorder %s499_s29, %s598_s1 }
  0x19   : > { %p321_p4 = pnand %p320_p3, %p319_p2  ;;  %p325_p8 = scmp.lt.u32.totalorder %s323_s9, %s318_s6 }
  0x1a   : > { %p327_p9 = scmp.lt.u32.totalorder %s318_s6, %s499_s29 }
  0x1b   : > { %p322_p7 = pneg %p321_p4  ;;  %p326_p10 = por %p325_p8, %p324_p5 }
  0x1d   : > { %p328_p0 = por %p327_p9, %p326_p10 }
  0x1f   : > { %p329_p1 = pnand %p328_p0, %p322_p7 }
  0x21   : > { %332 = shalt.err (!%p329_p1)
}
  0x22   : > { %s333_s17 = scalar_lea.vmem %s507_s3, 128  ;;  %s416_s18 = smov [#allocation3]  }
  0x23   : > { %p334_p2 = scmp.ne.s32.totalorder %s507_s3, %s333_s17  ;;  %s338_s20 = sshll.u32 %s416_s18, 4  ;;  %s339_s20 = int_to_ptr.vmem [resolvable:$false] %s338_s20 }
  0x24   : > { %s340_s24 = scalar_lea.vmem %s339_s20, 256  ;;  %p341_p11 = scmp.lt.s32.totalorder %s507_s3, %s339_s20 }
  0x25   : > { %p336_p4 = pnand %p334_p2, %p320_p3  ;;  %p342_p5 = scmp.lt.s32.totalorder %s340_s24, %s333_s17 }
  0x27   : > { %p337_p12 = pneg %p336_p4  ;;  %p343_p8 = por %p342_p5, %p341_p11 }
  0x29   : > { %p344_p9 = pnand %p343_p8, %p337_p12 }
  0x2b   : > { %347 = shalt.err (!%p344_p9)
}
  0x2c   : > { %277 = dma.hbm_to_vmem [thread:$0]  (!%p503_p13), %s499_s29, 128, %s507_s3, %s114_s5  }
  0x2d   : > { %p606_p0 = scmp.lt.s32.totalorder %s414_s14, 3  ;;  %p607_p1 = scmp.ge.s32.totalorder %s414_s14, 1 }
  0x2f   : > { %p130_p3 = pnand %p607_p1, %p606_p0 }
  0x30   : > { %s541_s25 = sand.u32 (!%p130_p3), 1, %s406_s12  }
  0x31   : > { %133 = sbr.rel (%p130_p3) target bundleno = 142 (0x8e), region = 28  ;;  %s261_s26 = sshll.u32 (!%p130_p3), %s541_s25, 3 }
  0x32   : > { %s136_s27 = scalar_lea.sflag (!%p130_p3), [#allocation4], %s541_s25  ;;  %s139_s28 = scalar_lea.vmem (!%p130_p3), [#allocation3], %s261_s26 }
  0x38   : > { %393 = dma.done.wait (%p479_p6), %s136_s27, 128  }
  0x39   : > { %395 = vsyncadd (%p479_p6), %s136_s27, 4294967168  ;;  %s160_s29 = sld [smem:[#allocation2]]  ;;  %v164_v2 = vld [vmem:[%s139_s28] sm:$0xff]  ;;  %s264_s30 = sshll.u32 %s457_s0, 7 }
  0x3a   : > { %s159_s3 = scalar_lea.vmem [#allocation6], %s261_s26  ;;  %s553_s7 = scalar_lea.hbm %s599_s2, %s264_s30 }
  0x3b   : > { %s185_s4 = sshll.u32 %s159_s3, 4  ;;  %s172_s8 = scalar_lea.sflag [#allocation5], %s541_s25  ;;  %s555_s4 = int_to_ptr.vmem [resolvable:$true] %s185_s4 }
  0x3c   : > { %s348_s9 = scalar_lea.vmem %s555_s4, 128  ;;  %p608_p11 = scmp.ne.s32.totalorder %s603_s22, 0 }
  0x3d   : > { %p349_p6 = scmp.ne.s32.totalorder %s555_s4, %s348_s9  ;;  %s417_s0 = smov [#allocation6]  }
  0x3e   : > { %s352_s10 = sshll.u32 %s417_s0, 4  ;;  %s353_s10 = int_to_ptr.vmem [resolvable:$false] %s352_s10 }
  0x3f   : > { %v161_v0 = vstv %s160_s29  ;;  %p350_p12 = pnand %p349_p6, %p608_p11  ;;  %s354_s15 = scalar_lea.vmem %s353_s10, 256 }
  0x40   : > { %316 = vrcp.f32 %v161_v0  ;;  %v166_v3 = vmul.f32 %v164_v2, %v161_v0  ;;  %p355_p7 = scmp.lt.s32.totalorder %s555_s4, %s353_s10  ;;  %p356_p10 = scmp.lt.s32.totalorder %s354_s15, %s348_s9 }
  0x41   : > { %p351_p13 = pneg %p350_p12 }
  0x42   : > { %v269_v4 = vround.rtne.f32 %v166_v3  ;;  %p357_p2 = por %p356_p10, %p355_p7 }
  0x44   : > { %p358_p4 = pnand %p357_p2, %p351_p13 }
  0x4a   : > { %v317_v1 = vpop.eup %316 }
  0x4b   : > { %267 = vpush %v317_v1 }
  0x7c   : > { %s268_s5 = spop %267 }
  0x7d   : > { %v168_v5 = vstv %s268_s5 }
  0x7e   : > { %v169_v6 = vmul.f32 %v269_v4, %v168_v5 }
  0x80   : > { %170 = vst [vmem:[%s159_s3] sm:$0xff] %v169_v6 }
  0x81   : > { %361 = shalt.err (!%p358_p4)
}
  0x82   : > { %s362_s17 = scalar_lea.hbm %s553_s7, 128  ;;  %s366_s24 = scalar_lea.hbm %s599_s2, 256 }
  0x83   : > { %p363_p5 = scmp.ne.s32.totalorder %s553_s7, %s362_s17  ;;  %p367_p0 = scmp.lt.u32.totalorder %s553_s7, %s599_s2 }
  0x84   : > { %p368_p1 = scmp.lt.u32.totalorder %s366_s24, %s362_s17  ;;  %p370_p6 = scmp.lt.u32.totalorder %s362_s17, %s553_s7 }
  0x85   : > { %p364_p8 = pnand %p363_p5, %p608_p11 }
  0x86   : > { %p369_p3 = por %p368_p1, %p367_p0 }
  0x87   : > { %p365_p9 = pneg %p364_p8 }
  0x88   : > { %p371_p12 = por %p370_p6, %p369_p3 }
  0x8a   : > { %p372_p13 = pnand %p371_p12, %p365_p9 }
  0x8c   : > { %375 = shalt.err (!%p372_p13)
}
  0x8d   : > { %272 = dma.vmem_to_hbm [thread:$0]  (%p608_p11), %s555_s4, 128, %s553_s7, %s172_s8  }
  0x8e PF: > { %s197_s27 = sand.u32 1, %s402_s11   ;;  %p609_p7 = scmp.ne.s32.totalorder %s604_s23, 0 }
  0x8f   : > { %p610_p10 = scmp.ge.s32.totalorder %s414_s14, 2  ;;  %s198_s28 = scalar_lea.sflag [#allocation5], %s197_s27 }
  0x91   : > { %p279_p2 = pnand %p610_p10, %p609_p7 }
  0x93   : > { %397 = dma.done.wait (!%p279_p2), %s198_s28, 128  }
  0x94   : > { %399 = vsyncadd (!%p279_p2), %s198_s28, 4294967168  ;;  %p16_p4 = scmp.ge.s32.totalorder %s461_s16, 4   ;;  %s611_s11 = smov %s406_s12 }
  0x95   : > { %s612_s12 = smov %s410_s13  ;;  %s613_s13 = smov %s473_s19 }
  0x96   : > { %s614_s14 = smov %s461_s16  ;;  %18 = sbr.rel (!%p16_p4) target bundleno = 7 (0x7), region = 73 }
  0x9d   :  { %203 = vsyncpa [#allocation4], 1 }
  0x9e   :  { %205 = vsyncpa [#allocation4 + $0x1], 1 }
  0x9f   :  { %206 = vsyncpa [#allocation5], 1 }
  0xa0   :  { %208 = vsyncpa [#allocation5 + $0x1], 1 }

</bundles_post_ra>
